<compile_context>
chip_gen: v5e
topology: v5e:2x2
jax: 0.10.0
libtpu: 0.0.40
codegen_flags: <defaults>
</compile_context>

<pallas_src>
import jax
import jax.numpy as jnp
import numpy as np
from jax.experimental import pallas as pl
from jax.experimental.pallas import tpu as pltpu


def _align8(n: int) -> int:
    return (n + 7) // 8 * 8


# ----------------------------------------------------------------------------
# Parameter folding + packing (host/XLA side, done once)
# ----------------------------------------------------------------------------
def fold_and_pack_params(params, input_shape, hidden1, hidden2, n_labels):
    (emb_ws, emb_bs, w1, b1, w2, b2, wl, bl, wn, bn) = params

    d_cat = input_shape + sum(we.shape[0] for we in emb_ws)  # raw (un-embedded) width

    # --- fold embedding linears into hidden1 ---
    w_in_parts = [w1[:input_shape]]
    b_in = b1
    off = input_shape
    for we, be in zip(emb_ws, emb_bs):
        a = we.shape[1]                       # after_emb_len for this embedding
        w1_seg = w1[off:off + a]              # (a, H1)
        w_in_parts.append(we @ w1_seg)        # (emb_len_i, H1)
        b_in = b_in + be @ w1_seg             # (1, H1)
        off += a
    w_in = jnp.concatenate(w_in_parts, axis=0)        # (d_cat, H1)

    # --- fold per-label heads (last_layer + two normalization linears) ---
    n_out = 2 * n_labels
    w_heads = jnp.concatenate([wl[i] @ wn[i] for i in range(n_labels)], axis=1)          # (H2, n_out)
    b_heads = jnp.concatenate([bl[i] @ wn[i] + bn[i] for i in range(n_labels)], axis=1)  # (1, n_out)

    width = _align8(max(hidden1, hidden2, n_out))
    d_cat_pad = _align8(d_cat)

    def pad_to(a, rows, cols):
        return jnp.pad(a, ((0, rows - a.shape[0]), (0, cols - a.shape[1])))

    names = ["w_in", "b_in", "w2", "b2", "w_heads", "b_heads"]
    sections = [
        pad_to(w_in, d_cat_pad, width),   # zero rows/cols keep the math exact
        pad_to(b_in, 8, width),
        pad_to(w2, width, width),
        pad_to(b2, 8, width),
        pad_to(w_heads, width, width),
        pad_to(b_heads, 8, width),
    ]
    offsets = {}
    row = 0
    for name, sec in zip(names, sections):
        offsets[name] = row
        row += sec.shape[0]
    slab = jnp.concatenate(sections, axis=0).astype(jnp.float32)   # (rows, width)

    meta = dict(offsets=offsets, d_cat=d_cat, d_cat_pad=d_cat_pad,
                width=width, n_out=n_out)
    return slab, meta


# ----------------------------------------------------------------------------
# Fused kernel: relu(X @ W_in + b_in) -> relu(. @ W2 + b2) -> . @ W_heads + b_heads
# ----------------------------------------------------------------------------
def _make_fused_kernel(meta):
    offs = meta["offsets"]
    width = meta["width"]
    d_cat_pad = meta["d_cat_pad"]
    n_out = meta["n_out"]

    def kernel(x_ref, p_ref, o_ref):
        x = x_ref[...]                                               # (TB, d_cat_pad)
        w_in = p_ref[offs["w_in"]:offs["w_in"] + d_cat_pad, :]       # (d_cat_pad, width)
        b_in = p_ref[offs["b_in"]:offs["b_in"] + 1, :]               # (1, width)
        w2 = p_ref[offs["w2"]:offs["w2"] + width, :]                 # (width, width)
        b2 = p_ref[offs["b2"]:offs["b2"] + 1, :]
        wh = p_ref[offs["w_heads"]:offs["w_heads"] + width, :]       # (width, width)
        bh = p_ref[offs["b_heads"]:offs["b_heads"] + 1, :]

        # dropout == identity (eval mode)
        h1 = jnp.maximum(jnp.dot(x, w_in, preferred_element_type=jnp.float32) + b_in, 0.0)
        h2 = jnp.maximum(jnp.dot(h1, w2, preferred_element_type=jnp.float32) + b2, 0.0)
        out = jnp.dot(h2, wh, preferred_element_type=jnp.float32) + bh   # (TB, width)
        o_ref[...] = out[:, :n_out].astype(o_ref.dtype)                  # single lane-dense store

    return kernel


def embedding_model_forward(x, x_for_embedding, slab, meta):
    """Runs the fused kernel. Returns a list of (B, 2) arrays, one per label."""
    B = x.shape[0]
    d_cat = meta["d_cat"]
    d_cat_pad = meta["d_cat_pad"]
    n_out = meta["n_out"]

    # Raw concat (embedding linears already folded into the slab), zero-padded to
    # the 8-aligned feature width the kernel expects.
    x_cat = jnp.concatenate([x] + list(x_for_embedding), axis=1)
    assert x_cat.shape[1] == d_cat
    x_cat = jnp.pad(x_cat, ((0, 0), (0, d_cat_pad - d_cat))).astype(jnp.float32)

    # Batch tile: single block for small B; a parallel grid (megacore-shardable)
    # with resident weights if B ever grows.
    TB = B if B <= 1024 else 512
    grid = (pl.cdiv(B, TB),)

    out = pl.pallas_call(
        _make_fused_kernel(meta),
        out_shape=jax.ShapeDtypeStruct((B, n_out), jnp.float32),
        grid=grid,
        in_specs=[
            pl.BlockSpec((TB, d_cat_pad), lambda i: (i, 0)),   # activations: tiled over batch
            pl.BlockSpec(slab.shape, lambda i: (0, 0)),        # params: resident across grid
        ],
        out_specs=pl.BlockSpec((TB, n_out), lambda i: (i, 0)),
        compiler_params=pltpu.CompilerParams(dimension_semantics=("parallel",)),
    )(x_cat, slab)

    return [out[:, 2 * i:2 * i + 2] for i in range(n_out // 2)]


# ----------------------------------------------------------------------------
# Unfused parameter init + pure-JAX reference (mirrors the PyTorch module)
# ----------------------------------------------------------------------------
def init_params(key, input_shape, emb_len, hidden1, hidden2, n_labels):
    after_emb_len = [int(round(e / 3)) for e in emb_len]
    d_in = input_shape + sum(after_emb_len)

    keys = iter(jax.random.split(key, 64))

    def lin(k, fan_in, fan_out):
        kw, kb = jax.random.split(k)
        w = jax.random.normal(kw, (fan_in, fan_out), jnp.float32) * 0.1
        b = jax.random.normal(kb, (1, fan_out), jnp.float32) * 0.1
        return w, b

    emb_ws, emb_bs = [], []
    for e, a in zip(emb_len, after_emb_len):
        w, b = lin(next(keys), e, a)
        emb_ws.append(w)
        emb_bs.append(b)

    w1, b1 = lin(next(keys), d_in, hidden1)
    w2, b2 = lin(next(keys), hidden1, hidden2)

    wl_list, bl_list, wn_list, bn_list = [], [], [], []
    for _ in range(n_labels):
        w_last, b_last = lin(next(keys), hidden2, 2)
        w_n0, b_n0 = lin(next(keys), 2, 1)
        w_n1, b_n1 = lin(next(keys), 2, 1)
        wl_list.append(w_last)
        bl_list.append(b_last)
        wn_list.append(jnp.concatenate([w_n0, w_n1], axis=1))   # (2, 2)
        bn_list.append(jnp.concatenate([b_n0, b_n1], axis=1))   # (1, 2)

    wl = jnp.stack(wl_list)   # (n_labels, hidden2, 2)
    bl = jnp.stack(bl_list)   # (n_labels, 1, 2)
    wn = jnp.stack(wn_list)   # (n_labels, 2, 2)
    bn = jnp.stack(bn_list)   # (n_labels, 1, 2)

    return (emb_ws, emb_bs, w1, b1, w2, b2, wl, bl, wn, bn), after_emb_len


def reference_forward(x, x_for_embedding, params):
    (emb_ws, emb_bs, w1, b1, w2, b2, wl, bl, wn, bn) = params
    emb_outs = [e @ w + b for e, w, b in zip(x_for_embedding, emb_ws, emb_bs)]
    x_in = jnp.concatenate([x] + emb_outs, axis=1)
    h1 = jnp.maximum(x_in @ w1 + b1, 0.0)
    h2 = jnp.maximum(h1 @ w2 + b2, 0.0)
    preds = []
    for i in range(wl.shape[0]):
        p = h2 @ wl[i] + bl[i]
        preds.append(p @ wn[i] + bn[i])
    return preds


if __name__ == "__main__":
    # Small shapes consistent with the module's forward
    B = 8
    input_shape = 16
    emb_len = [9, 6]           # after_emb_len = [3, 2]
    hidden1 = 32
    hidden2 = 16
    n_labels = 3

    key = jax.random.PRNGKey(0)
    k_params, k_x, *k_emb = jax.random.split(key, 2 + len(emb_len))

    params, after_emb_len = init_params(
        k_params, input_shape, emb_len, hidden1, hidden2, n_labels)

    x = jax.random.normal(k_x, (B, input_shape), jnp.float32)
    x_for_embedding = [
        jax.random.normal(k, (B, e), jnp.float32) for k, e in zip(k_emb, emb_len)
    ]

    slab, meta = fold_and_pack_params(params, input_shape, hidden1, hidden2, n_labels)

    preds = embedding_model_forward(x, x_for_embedding, slab, meta)
    preds = [jax.block_until_ready(p) for p in preds]

    refs = reference_forward(x, x_for_embedding, params)
    for p, r in zip(preds, refs):
        assert p.shape == (B, 2), p.shape
        np.testing.assert_allclose(np.asarray(p), np.asarray(r), rtol=1e-4, atol=1e-5)

    print("KERNEL_OK")
</pallas_src>

<mosaic_0001>
module attributes {stable_mosaic.version = 11 : i64} {
  func.func @kernel(%arg0: i32, %arg1: memref<8x32xf32, #tpu.memory_space<vmem>>, %arg2: memref<120x32xf32, #tpu.memory_space<vmem>>, %arg3: memref<8x6xf32, #tpu.memory_space<vmem>>) attributes {dimension_semantics = [#tpu.dimension_semantics<parallel>], iteration_bounds = array<i64: 1>, scalar_prefetch = 0 : i64, scratch_operands = 0 : i64, tpu.core_type = #tpu.core_type<tc>, window_params = [{transform_indices = @transform_0, window_bounds = array<i64: 8, 32>}, {pipeline_mode = #tpu.pipeline_mode<synchronous>, transform_indices = @transform_1, window_bounds = array<i64: 120, 32>}, {transform_indices = @transform_2, window_bounds = array<i64: 8, 6>}]} {
    %c0 = arith.constant 0 : index
    %c0_0 = arith.constant 0 : index
    %0 = vector.load %arg1[%c0, %c0_0] : memref<8x32xf32, #tpu.memory_space<vmem>>, vector<8x32xf32>
    %c0_1 = arith.constant 0 : index
    %c0_2 = arith.constant 0 : index
    %1 = vector.load %arg2[%c0_1, %c0_2] : memref<120x32xf32, #tpu.memory_space<vmem>>, vector<32x32xf32>
    %c32 = arith.constant 32 : index
    %c0_3 = arith.constant 0 : index
    %2 = vector.load %arg2[%c32, %c0_3] : memref<120x32xf32, #tpu.memory_space<vmem>>, vector<1x32xf32>
    %c40 = arith.constant 40 : index
    %c0_4 = arith.constant 0 : index
    %3 = vector.load %arg2[%c40, %c0_4] : memref<120x32xf32, #tpu.memory_space<vmem>>, vector<32x32xf32>
    %c72 = arith.constant 72 : index
    %c0_5 = arith.constant 0 : index
    %4 = vector.load %arg2[%c72, %c0_5] : memref<120x32xf32, #tpu.memory_space<vmem>>, vector<1x32xf32>
    %c80 = arith.constant 80 : index
    %c0_6 = arith.constant 0 : index
    %5 = vector.load %arg2[%c80, %c0_6] : memref<120x32xf32, #tpu.memory_space<vmem>>, vector<32x32xf32>
    %c112 = arith.constant 112 : index
    %c0_7 = arith.constant 0 : index
    %6 = vector.load %arg2[%c112, %c0_7] : memref<120x32xf32, #tpu.memory_space<vmem>>, vector<1x32xf32>
    %cst = arith.constant dense<0.000000e+00> : vector<8x32xf32>
    %7 = tpu.matmul %0, %1, %cst {dimension_numbers = #tpu.dot_dimension_numbers<[1], [0], [0], [1], [0, 0, 1, 1], [], []>} : vector<8x32xf32>, vector<32x32xf32>, vector<8x32xf32> -> vector<8x32xf32>
    %8 = vector.broadcast %2 : vector<1x32xf32> to vector<8x32xf32>
    %9 = arith.addf %7, %8 : vector<8x32xf32>
    %cst_8 = arith.constant 0.000000e+00 : f32
    %10 = vector.broadcast %cst_8 : f32 to vector<8x32xf32>
    %11 = arith.maximumf %9, %10 : vector<8x32xf32>
    %cst_9 = arith.constant dense<0.000000e+00> : vector<8x32xf32>
    %12 = tpu.matmul %11, %3, %cst_9 {dimension_numbers = #tpu.dot_dimension_numbers<[1], [0], [0], [1], [0, 0, 1, 1], [], []>} : vector<8x32xf32>, vector<32x32xf32>, vector<8x32xf32> -> vector<8x32xf32>
    %13 = vector.broadcast %4 : vector<1x32xf32> to vector<8x32xf32>
    %14 = arith.addf %12, %13 : vector<8x32xf32>
    %cst_10 = arith.constant 0.000000e+00 : f32
    %15 = vector.broadcast %cst_10 : f32 to vector<8x32xf32>
    %16 = arith.maximumf %14, %15 : vector<8x32xf32>
    %cst_11 = arith.constant dense<0.000000e+00> : vector<8x32xf32>
    %17 = tpu.matmul %16, %5, %cst_11 {dimension_numbers = #tpu.dot_dimension_numbers<[1], [0], [0], [1], [0, 0, 1, 1], [], []>} : vector<8x32xf32>, vector<32x32xf32>, vector<8x32xf32> -> vector<8x32xf32>
    %18 = vector.broadcast %6 : vector<1x32xf32> to vector<8x32xf32>
    %19 = arith.addf %17, %18 : vector<8x32xf32>
    %20 = vector.extract_strided_slice %19 {offsets = [0, 0], sizes = [8, 6], strides = [1, 1]} : vector<8x32xf32> to vector<8x6xf32>
    %c0_12 = arith.constant 0 : index
    %c0_13 = arith.constant 0 : index
    %21 = vector.load %arg3[%c0_12, %c0_13] : memref<8x6xf32, #tpu.memory_space<vmem>>, vector<8x6xf32>
    tpu.vector_store %arg3[%c0_12, %c0_13], %20 {strides = array<i32>} : memref<8x6xf32, #tpu.memory_space<vmem>>, vector<8x6xf32>,
    return
  }
  func.func @transform_0(%arg0: i32) -> (i32, i32) {
    %c0_i32 = arith.constant 0 : i32
    %c0_i32_0 = arith.constant 0 : i32
    return %arg0, %c0_i32 : i32, i32
  }
  func.func @transform_1(%arg0: i32) -> (i32, i32) {
    %c0_i32 = arith.constant 0 : i32
    %c0_i32_0 = arith.constant 0 : i32
    %c0_i32_1 = arith.constant 0 : i32
    return %c0_i32, %c0_i32_0 : i32, i32
  }
  func.func @transform_2(%arg0: i32) -> (i32, i32) {
    %c0_i32 = arith.constant 0 : i32
    %c0_i32_0 = arith.constant 0 : i32
    return %arg0, %c0_i32 : i32, i32
  }
}

</mosaic_0001>

<bundles_post_ra>
// kernel: tpu_custom_call.1
= control target key start
LH: loop header
LB: loop body
LE: loop exit
PB: predicated region body
PF: predicated region fallthrough
CT: control target
= control target key end

     0   :  { %s224_s0 = inlined_call_operand.vmem [shape: f32[8,32], index: 0, kind: input, shape index: {}]   ;;  %s225_s1 = inlined_call_operand.vmem [shape: f32[120,32], index: 1, kind: input, shape index: {}]   ;;  %s226_s2 = inlined_call_operand.hbm [shape: f32[8,6], index: 2, kind: output, shape index: {}]  }
   0x1   :  { %v16_v0 = vld [vmem:[%s225_s1 + $0x18] sm:$0xff]  ;;  %v15_v1 = vld [vmem:[%s225_s1 + $0x10] sm:$0xff]  ;;  %v21_v2 = vld [vmem:[%s225_s1 + $0x40] sm:$0xff] }
   0x2   :  { %45 = vmatpush.msra.mxu0 %v16_v0  ;;  %v14_v3 = vld [vmem:[%s225_s1 + $0x8] sm:$0xff]  ;;  %70 = vmatpush.msra.mxu1 %v21_v2 }
   0x4   :  { %46 = vmatpush.msra.mxu0 %v15_v1 }
   0x5   :  { %7 = vsyncpa [#allocation3], 0  ;;  %v13_v4 = vld [vmem:[%s225_s1] sm:$0xff]  ;;  %vm29_vm0 = vcmask 261120   ;;  %v20_v6 = vld [vmem:[%s225_s1 + $0x38] sm:$0xff]  ;;  %s154_s12 = smov [#allocation2]  }
   0x6   :  { %47 = vmatpush.msra.mxu0 %v14_v3  ;;  %v12_v5 = vld [vmem:[%s224_s0] sm:$0xff]  ;;  %71 = vmatpush.msra.mxu1 %v20_v6  ;;  %v19_v7 = vld [vmem:[%s225_s1 + $0x30] sm:$0xff]  ;;  %v18_v8 = vld [vmem:[%s225_s1 + $0x28] sm:$0xff]  ;;  %s110_s13 = sshll.u32 %s154_s12, 4  ;;  %s112_s16 = sshll.u32 %s226_s2, 4  ;;  %vm103_vm1 = vcmask 48128   ;;  %s111_s13 = int_to_ptr.vmem [resolvable:$true] %s110_s13  ;;  %s113_s16 = int_to_ptr.hbm [resolvable:$true] %s112_s16 }
   0x7   :  { %v26_v9 = vld [vmem:[%s225_s1 + $0x68] sm:$0xff]  ;;  %v125_v10 = vld [vmem:[%s225_s1 + $0x20] ss:$0 sm:$0xff]  ;;  %v24_v15 = vld [vmem:[%s225_s1 + $0x58] sm:$0xff] }
   0x8   :  { %48 = vmatpush.msra.mxu0 %v13_v4  ;;  %72 = vmatpush.msra.mxu1 %v19_v7  ;;  %v25_v14 = vld [vmem:[%s225_s1 + $0x60] sm:$0xff]  ;;  %v23_v16 = vld [vmem:[%s225_s1 + $0x50] sm:$0xff]  ;;  %v126_v17 = vld [vmem:[%s225_s1 + $0x48] ss:$0 sm:$0xff] }
   0x9   :  { %121 = vmatmul.msk.f32.vlgmr.msra.gmra.mxu0 %vm29_vm0, %v12_v5  ;;  %95 = vmatpush.msra.mxu2 %v26_v9  ;;  %v127_v21 = vld [vmem:[%s225_s1 + $0x70] ss:$0 sm:$0xff] }
   0xa   :  { %73 = vmatpush.msra.mxu1 %v18_v8 }
   0xb   :  { %96 = vmatpush.msra.mxu2 %v25_v14 }
   0xd   :  { %97 = vmatpush.msra.mxu2 %v24_v15 }
   0xf   :  { %98 = vmatpush.msra.mxu2 %v23_v16 }
  0x86   :  { %v50_v11 = vpop.f32.mrf.mxu0 }
  0x87   :  { %v51_v12 = vadd.f32 %v125_v10, %v50_v11 }
  0x89   :  { %v53_v13 = vmax.f32 %v51_v12, 0.0 }
  0x8b   :  { %122 = vmatmul.msk.f32.vlgmr.msra.gmra.mxu1 %vm29_vm0, %v53_v13 }
 0x108   :  { %v75_v18 = vpop.f32.mrf.mxu1 }
 0x109   :  { %v76_v19 = vadd.f32 %v126_v17, %v75_v18 }
 0x10b   :  { %v78_v20 = vmax.f32 %v76_v19, 0.0 }
 0x10d   :  { %123 = vmatmul.msk.f32.vlgmr.msra.gmra.mxu2 %vm29_vm0, %v78_v20 }
 0x190   :  { %v100_v22 = vpop.f32.mrf.mxu2 }
 0x191   :  { %v101_v23 = vadd.f32 %v127_v21, %v100_v22 }
 0x193   :  { %104 = vst.msk [vmem:[#allocation2] sm:$0xff] %vm103_vm1, %v101_v23 }
 0x194   :  { %115 = dma.vmem_to_hbm [thread:$0]  %s111_s13, 128, %s113_s16, [#allocation3]  }
 0x195   :  { %152 = dma.done.wait [#allocation3], 128  }
 0x196   :  { %153 = vsyncadd [#allocation3], 4294967168 }
 0x197   :  { %120 = vsyncpa [#allocation3], 1 }

</bundles_post_ra>
